<compile_context>
chip_gen: v5e
topology: v5e:2x2
jax: 0.10.0
libtpu: 0.0.40
codegen_flags: <defaults>
</compile_context>

<pallas_src>
import functools

import numpy as np
import jax
import jax.numpy as jnp
from jax.experimental import pallas as pl
from jax.experimental.pallas import tpu as pltpu


def _axis_matrix(out_size: int, in_size: int, mode: str) -> np.ndarray:
    """(out_size, in_size) row-stochastic 1-D resize matrix, PyTorch semantics."""
    if mode == "nearest":
        src = np.floor(np.arange(out_size) * (in_size / out_size)).astype(np.int64)
        src = np.clip(src, 0, in_size - 1)
        m = np.zeros((out_size, in_size), np.float32)
        m[np.arange(out_size), src] = 1.0
        return m
    if mode != "bilinear":
        # TODO(synk): 'bicubic'/'trilinear' modes not implemented.
        raise NotImplementedError(f"mode={mode!r}")
    if in_size == 1:
        return np.ones((out_size, 1), np.float32)
    # bilinear, align_corners=False (half-pixel centers), antialias=False
    # like F.interpolate; differs from jax.image.resize for strong downsampling.
    scale = in_size / out_size
    dst = np.arange(out_size, dtype=np.float64)
    src = np.clip((dst + 0.5) * scale - 0.5, 0.0, in_size - 1)
    lo = np.clip(np.floor(src).astype(np.int64), 0, in_size - 1)
    hi = np.minimum(lo + 1, in_size - 1)
    frac = (src - lo).astype(np.float32)
    m = np.zeros((out_size, in_size), np.float32)
    rows = np.arange(out_size)
    m[rows, lo] += 1.0 - frac
    m[rows, hi] += frac
    return m


def _pick_channel_block(nc: int, k: int, n: int, dtype_bytes: int,
                        vmem_budget: int = 40 << 20,
                        target_in_bytes: int = 256 << 10) -> int:
    """Channels per grid step: a multiple of 8 (sublane rule), preferring the
    smallest block whose per-step input DMA is >= ~256 KiB while still leaving
    >= 2 grid steps (amortizes per-step overhead, feeds both v7x TensorCores),
    all under a cap for weight + double-buffered in/out blocks."""
    nc8 = ((nc + 7) // 8) * 8

    def vmem_need(b):
        return 2 * dtype_bytes * (k * n + b * (k + n))

    b_max = 8
    while b_max + 8 <= nc8 and vmem_need(b_max + 8) <= vmem_budget:
        b_max += 8
    for b in range(8, b_max + 1, 8):
        if b * k * dtype_bytes >= target_in_bytes and nc8 > b:
            return b
    return min(nc8, b_max)


def _fused_resize_kernel(w_ref, x_ref, o_ref, *, mxu_dtype):
    # w_ref: (Hin*Win, n_blk)  fused 2-D resize weights (transposed kron(Wh, Ww))
    # x_ref: (bch, Hin*Win)    channel block; flattened input pixels on lanes
    # o_ref: (bch, n_blk)      lane-dense output block
    x = x_ref[...]
    if mxu_dtype is not None:
        x = x.astype(mxu_dtype)
    o_ref[...] = jnp.dot(x, w_ref[...],
                         preferred_element_type=jnp.float32).astype(o_ref.dtype)


@functools.partial(jax.jit, static_argnames=("size", "mode", "mxu_bf16"))
def interpolate(x: jnp.ndarray, size, mode: str = "bilinear",
                mxu_bf16: bool = False) -> jnp.ndarray:
    """x: (N, C, H, W) -> (N, C, size[0], size[1]).  align_corners=False
    semantics (the PyTorch module's forward always uses them)."""
    n, c, h, w = x.shape
    h_out, w_out = size
    nc, k, n_out = n * c, h * w, h_out * w_out

    if x.dtype == jnp.bfloat16:
        compute_dtype, mxu_cast = jnp.bfloat16, None
    elif mxu_bf16:
        compute_dtype, mxu_cast = jnp.bfloat16, jnp.bfloat16
    else:
        compute_dtype, mxu_cast = jnp.float32, None
    dtype_bytes = 2 if compute_dtype == jnp.bfloat16 else 4

    # Fused 2-D weight; size is fixed by the resize, independent of channels.
    # TODO(synk): very large spatial resizes (k * n_out weight beyond VMEM)
    # would need a separable two-pass kernel; StyleCineGAN's uses are small.
    wh = _axis_matrix(h_out, h, mode)            # (Hout, Hin)
    ww = _axis_matrix(w_out, w, mode)            # (Wout, Win)
    w2d = jnp.asarray(np.kron(wh.T, ww.T), dtype=compute_dtype)   # (k, n_out)
    assert 2 * k * n_out * dtype_bytes <= (24 << 20), (
        "fused resize weight too large for VMEM; see TODO(synk) above")

    bch = _pick_channel_block(nc, k, n_out, dtype_bytes)
    nc_pad = ((nc + bch - 1) // bch) * bch

    # Layout plumbing is free: pure dim-collapse reshapes, no transposes.
    xf = x.reshape(nc, k)
    if nc_pad != nc:
        xf = jnp.pad(xf, ((0, nc_pad - nc), (0, 0)))

    # If N*C only yields one grid step, split the output lanes so v7x's two
    # TensorCores each get a "parallel" step (each half stays 128-aligned).
    out_splits = 2 if (nc_pad // bch) < 2 and n_out % 256 == 0 else 1
    n_blk = n_out // out_splits

    # Explicit VMEM budget: double-buffered weight + input + output blocks,
    # with headroom, clamped below v7x's 64 MiB physical VMEM.
    need = 2 * dtype_bytes * (k * n_blk + bch * k + bch * n_blk)
    vmem_limit = int(min(48 << 20, max(32 << 20, 2 * need)))

    out_flat = pl.pallas_call(
        functools.partial(_fused_resize_kernel, mxu_dtype=mxu_cast),
        out_shape=jax.ShapeDtypeStruct((nc_pad, n_out), x.dtype),
        grid_spec=pltpu.PrefetchScalarGridSpec(
            num_scalar_prefetch=0,
            grid=(nc_pad // bch, out_splits),
            in_specs=[
                # Fused weights: block index varies only with j, so with
                # out_splits == 1 the weight stays resident across the grid.
                pl.BlockSpec((k, n_blk), lambda g, j: (0, j)),
                # Channel-blocked input slab (bch sublane rows, k lanes).
                pl.BlockSpec((bch, k), lambda g, j: (g, 0)),
            ],
            out_specs=pl.BlockSpec((bch, n_blk), lambda g, j: (g, j)),
        ),
        compiler_params=pltpu.CompilerParams(
            dimension_semantics=("parallel", "parallel"),
            vmem_limit_bytes=vmem_limit),
    )(w2d, xf)

    # Undo the (free) collapse: (NC, Hout*Wout) -> (N, C, Hout, Wout).
    return out_flat[:nc].reshape(n, c, h_out, w_out)


if __name__ == "__main__":
    key = jax.random.PRNGKey(0)
    x = jax.random.normal(key, (2, 4, 16, 16), dtype=jnp.float32)

    size = (32, 32)  # Interpolate(size=(32,32), mode='bilinear', align_corners=False)
    out = interpolate(x, size=size, mode="bilinear")
    jax.block_until_ready(out)
    assert out.shape == (2, 4, 32, 32)

    # Sanity check: half-pixel-center bilinear upsampling matches
    # F.interpolate(align_corners=False) and jax.image.resize('bilinear').
    ref = jax.image.resize(x, (2, 4, 32, 32), method="bilinear")
    assert float(jnp.max(jnp.abs(out - ref))) < 1e-4

    print("KERNEL_OK")
</pallas_src>

<mosaic_0001>
module attributes {stable_mosaic.version = 11 : i64} {
  func.func @_fused_resize_kernel(%arg0: i32, %arg1: i32, %arg2: memref<256x512xf32, #tpu.memory_space<vmem>>, %arg3: memref<8x256xf32, #tpu.memory_space<vmem>>, %arg4: memref<8x512xf32, #tpu.memory_space<vmem>>) attributes {dimension_semantics = [#tpu.dimension_semantics<parallel>, #tpu.dimension_semantics<parallel>], iteration_bounds = array<i64: 1, 2>, scalar_prefetch = 0 : i64, scratch_operands = 0 : i64, tpu.core_type = #tpu.core_type<tc>, window_params = [{transform_indices = @transform_0, window_bounds = array<i64: 256, 512>}, {transform_indices = @transform_1, window_bounds = array<i64: 8, 256>}, {transform_indices = @transform_2, window_bounds = array<i64: 8, 512>}]} {
    %c0 = arith.constant 0 : index
    %c0_0 = arith.constant 0 : index
    %0 = vector.load %arg3[%c0, %c0_0] : memref<8x256xf32, #tpu.memory_space<vmem>>, vector<8x256xf32>
    %c0_1 = arith.constant 0 : index
    %c0_2 = arith.constant 0 : index
    %1 = vector.load %arg2[%c0_1, %c0_2] : memref<256x512xf32, #tpu.memory_space<vmem>>, vector<256x512xf32>
    %cst = arith.constant dense<0.000000e+00> : vector<8x512xf32>
    %2 = tpu.matmul %0, %1, %cst {dimension_numbers = #tpu.dot_dimension_numbers<[1], [0], [0], [1], [0, 0, 1, 1], [], []>} : vector<8x256xf32>, vector<256x512xf32>, vector<8x512xf32> -> vector<8x512xf32>
    %c0_3 = arith.constant 0 : index
    %c0_4 = arith.constant 0 : index
    %3 = vector.load %arg4[%c0_3, %c0_4] : memref<8x512xf32, #tpu.memory_space<vmem>>, vector<8x512xf32>
    tpu.vector_store %arg4[%c0_3, %c0_4], %2 {strides = array<i32>} : memref<8x512xf32, #tpu.memory_space<vmem>>, vector<8x512xf32>,
    return
  }
  func.func @transform_0(%arg0: i32, %arg1: i32) -> (i32, i32) {
    %c0_i32 = arith.constant 0 : i32
    %c0_i32_0 = arith.constant 0 : i32
    return %c0_i32, %arg1 : i32, i32
  }
  func.func @transform_1(%arg0: i32, %arg1: i32) -> (i32, i32) {
    %c0_i32 = arith.constant 0 : i32
    %c0_i32_0 = arith.constant 0 : i32
    return %arg0, %c0_i32 : i32, i32
  }
  func.func @transform_2(%arg0: i32, %arg1: i32) -> (i32, i32) {
    %c0_i32 = arith.constant 0 : i32
    return %arg0, %arg1 : i32, i32
  }
}

</mosaic_0001>

<bundles_post_ra>
// kernel: interpolate.1
= control target key start
LH: loop header
LB: loop body
LE: loop exit
PB: predicated region body
PF: predicated region fallthrough
CT: control target
= control target key end

     0   :  { %7 = vsyncpa [#allocation3], 0  ;;  %s1007_s0 = inlined_call_operand.hbm [shape: f32[256,1024], index: 0, kind: input, shape index: {}]   ;;  %s1008_s1 = inlined_call_operand.vmem [shape: f32[8,256], index: 1, kind: input, shape index: {}]   ;;  %s1009_s2 = inlined_call_operand.vmem [shape: f32[8,1024], index: 2, kind: output, shape index: {}]  }
   0x1   :  { %9 = vsyncpa [#allocation3 + $0x1], 0  ;;  %s784_s9 = smov 0   ;;  %s786_s10 = smov 0  }
   0x2   :  { %s788_s11 = smov 0   ;;  %s790_s12 = smov 0  }
   0x3   :  { %s792_s13 = smov 0   ;;  %s794_s14 = smov 0  }
   0x4 LB: > { %s611_s15 = sadd.s32 4294967295, %s764_s14   ;;  %s24_s16 = sadd.s32 1, %s760_s13  ;;  %s764_s14 = sphi %s794_s14, %s15_s14   ;;  %s760_s13 = sphi %s792_s13, %s1016_s13   ;;  %s756_s12 = sphi %s790_s12, %s1015_s12   ;;  %s752_s11 = sphi %s788_s11, %s1014_s11   ;;  %s748_s10 = sphi %s786_s10, %s1013_s10   ;;  %s744_s9 = sphi %s784_s9, %s1012_s9  }
   0x5   : > { %p25_p0 = scmp.ge.s32.totalorder %s24_s16, 2  ;;  %s34_s17 = sadd.s32 1, %s752_s11 }
   0x6   : > { %p41_p1 = scmp.ne.s32.totalorder %s752_s11, %s748_s10  ;;  %p42_p2 = scmp.eq.s32.totalorder %s764_s14, 0 }
   0x7   : > { %s1018_s16 = smov (%p25_p0, %s24_s16), 0  ;;  %p47_p4 = scmp.ne.s32.totalorder %s748_s10, %s744_s9 }
   0x8   : > { %p820_p3 = por %p42_p2, %p41_p1  ;;  %s31_s19 = ssub.s32 %s760_s13, %s1018_s16 }
   0x9   : > { %p48_p5 = scmp.eq.s32.totalorder %s611_s15, 0  ;;  %p32_p6 = scmp.eq.s32.totalorder %s31_s19, 0 }
   0xa   : > { %p632_p8 = scmp.lt.s32.totalorder %s764_s14, 2  ;;  %s133_s22 = sand.u32 1, %s752_s11  }
   0xb   : > { %p827_p7 = por %p48_p5, %p47_p4  ;;  %s625_s23 = sshll.u32 %s760_s13, 5 }
   0xc   : > { %s833_s21 = scalar_select %p32_p6, %s752_s11, %s34_s17  }
   0xd   : > { %s616_s24 = sshll.u32 %s133_s22, 10  ;;  %s142_s27 = scalar_lea.hbm %s1007_s0, %s625_s23 }
   0xe   : > { %s143_s28 = sshll.u32 %s142_s27, 4  ;;  %s137_s29 = scalar_lea.vmem [#allocation2], %s616_s24  ;;  %s144_s28 = int_to_ptr.hbm [resolvable:$true] %s143_s28 }
   0xf   : > { %s145_s30 = sshll.u32 %s137_s29, 4  ;;  %p629_p9 = pnand %p632_p8, %p820_p3  ;;  %s146_s30 = int_to_ptr.vmem [resolvable:$true] %s145_s30 }
  0x10   : > { %p619_p10 = scmp.ge.s32.totalorder %s764_s14, 1  ;;  %s134_s3 = scalar_lea.sflag [#allocation3], %s133_s22 }
  0x11   : > { %s766_s4 = smov 1024   ;;  %s767_s5 = smov 512  }
  0x12   : > { %s768_s6 = smov 32   ;;  %p153_p11 = scmp.lt.s32.totalorder %s764_s14, 3 }
  0x13   : > { %631 = dma.hbm_to_vmem [thread:$0]  (!%p629_p9), %s144_s28, 16384, %s146_s30, %s134_s3, %s766_s4, %s767_s5, %s768_s6  }
  0x14   : > { %p154_p12 = pnand %p619_p10, %p153_p11 }
  0x15   : > { %s159_s7 = sand.u32 (!%p154_p12), 1, %s748_s10  }
  0x16   : > { %157 = sbr.rel (%p154_p12) target bundleno = 228 (0xe4), region = 28  ;;  %s620_s8 = sshll.u32 (!%p154_p12), %s159_s7, 10 }
  0x17   : > { %s160_s9 = scalar_lea.sflag (!%p154_p12), [#allocation3], %s159_s7  ;;  %s845_s15 = scalar_lea.vmem (!%p154_p12), [#allocation2], %s620_s8 }
  0x1b   : > { %739 = dma.done.wait (%p827_p7), %s160_s9, 16384  }
  0x1c   : > { %741 = vsyncadd (%p827_p7), %s160_s9, 4294950912  ;;  %v273_v0 = vld [vmem:[%s845_s15 + $0x1e8] sm:$0xff]  ;;  %v272_v6 = vld [vmem:[%s845_s15 + $0x1e0] sm:$0xff]  ;;  %s621_s22 = sshll.u32 %s756_s12, 2 }
  0x1d   : > { %v337_v1 = vld [vmem:[%s845_s15 + $0x3e8] sm:$0xff]  ;;  %380 = vmatpush.msra.mxu2 %v273_v0  ;;  %v336_v7 = vld [vmem:[%s845_s15 + $0x3e0] sm:$0xff]  ;;  %340 = vmatpush.msra.mxu0 %v272_v6  ;;  %v275_v60 = vld [vmem:[%s845_s15 + $0x1f8] sm:$0xff]  ;;  %p203_p13 = scmp.lt.s32.totalorder %s621_s22, 7 }
  0x1e   : > { %v269_v2 = vld [vmem:[%s845_s15 + $0x1c8] sm:$0xff]  ;;  %400 = vmatpush.msra.mxu3 %v337_v1  ;;  %v268_v8 = vld [vmem:[%s845_s15 + $0x1c0] sm:$0xff]  ;;  %360 = vmatpush.msra.mxu1 %v336_v7  ;;  %v339_v61 = vld [vmem:[%s845_s15 + $0x3f8] sm:$0xff] }
  0x1f   : > { %v333_v3 = vld [vmem:[%s845_s15 + $0x3c8] sm:$0xff]  ;;  %381 = vmatpush.msra.mxu2 %v269_v2  ;;  %v332_v9 = vld [vmem:[%s845_s15 + $0x3c0] sm:$0xff]  ;;  %341 = vmatpush.msra.mxu0 %v268_v8  ;;  %v271_v0 = vld [vmem:[%s845_s15 + $0x1d8] sm:$0xff]  ;;  %s1020_s22 = smov (!%p203_p13, %s621_s22), 7 }
  0x20   : > { %v265_v4 = vld [vmem:[%s845_s15 + $0x1a8] sm:$0xff]  ;;  %401 = vmatpush.msra.mxu3 %v333_v3  ;;  %v264_v12 = vld [vmem:[%s845_s15 + $0x1a0] sm:$0xff]  ;;  %361 = vmatpush.msra.mxu1 %v332_v9  ;;  %v335_v1 = vld [vmem:[%s845_s15 + $0x3d8] sm:$0xff]  ;;  %s622_s23 = sshll.u32 %s1020_s22, 3 }
  0x21   : > { %v329_v5 = vld [vmem:[%s845_s15 + $0x3a8] sm:$0xff]  ;;  %382 = vmatpush.msra.mxu2 %v265_v4  ;;  %v328_v13 = vld [vmem:[%s845_s15 + $0x3a0] sm:$0xff]  ;;  %342 = vmatpush.msra.mxu0 %v264_v12  ;;  %v267_v4 = vld [vmem:[%s845_s15 + $0x1b8] sm:$0xff]  ;;  %s208_s26 = scalar_lea.vmem %s1009_s2, %s622_s23 }
  0x22   : > { %v261_v10 = vld [vmem:[%s845_s15 + $0x188] sm:$0xff]  ;;  %402 = vmatpush.msra.mxu3 %v329_v5  ;;  %v260_v16 = vld [vmem:[%s845_s15 + $0x180] sm:$0xff]  ;;  %362 = vmatpush.msra.mxu1 %v328_v13  ;;  %v331_v5 = vld [vmem:[%s845_s15 + $0x3b8] sm:$0xff] }
  0x23   : > { %v325_v11 = vld [vmem:[%s845_s15 + $0x388] sm:$0xff]  ;;  %383 = vmatpush.msra.mxu2 %v261_v10  ;;  %v324_v17 = vld [vmem:[%s845_s15 + $0x380] sm:$0xff]  ;;  %343 = vmatpush.msra.mxu0 %v260_v16  ;;  %v274_v6 = vld [vmem:[%s845_s15 + $0x1f0] sm:$0xff] }
  0x24   : > { %v257_v14 = vld [vmem:[%s845_s15 + $0x168] sm:$0xff]  ;;  %403 = vmatpush.msra.mxu3 %v325_v11  ;;  %v256_v20 = vld [vmem:[%s845_s15 + $0x160] sm:$0xff]  ;;  %363 = vmatpush.msra.mxu1 %v324_v17  ;;  %v338_v7 = vld [vmem:[%s845_s15 + $0x3f0] sm:$0xff] }
  0x25   : > { %v321_v15 = vld [vmem:[%s845_s15 + $0x368] sm:$0xff]  ;;  %384 = vmatpush.msra.mxu2 %v257_v14  ;;  %v320_v21 = vld [vmem:[%s845_s15 + $0x360] sm:$0xff]  ;;  %344 = vmatpush.msra.mxu0 %v256_v20  ;;  %v263_v8 = vld [vmem:[%s845_s15 + $0x198] sm:$0xff] }
  0x26   : > { %v253_v18 = vld [vmem:[%s845_s15 + $0x148] sm:$0xff]  ;;  %404 = vmatpush.msra.mxu3 %v321_v15  ;;  %v252_v24 = vld [vmem:[%s845_s15 + $0x140] sm:$0xff]  ;;  %364 = vmatpush.msra.mxu1 %v320_v21  ;;  %v327_v9 = vld [vmem:[%s845_s15 + $0x398] sm:$0xff] }
  0x27   : > { %v317_v19 = vld [vmem:[%s845_s15 + $0x348] sm:$0xff]  ;;  %385 = vmatpush.msra.mxu2 %v253_v18  ;;  %v316_v25 = vld [vmem:[%s845_s15 + $0x340] sm:$0xff]  ;;  %345 = vmatpush.msra.mxu0 %v252_v24  ;;  %v270_v10 = vld [vmem:[%s845_s15 + $0x1d0] sm:$0xff] }
  0x28   : > { %v249_v22 = vld [vmem:[%s845_s15 + $0x128] sm:$0xff]  ;;  %405 = vmatpush.msra.mxu3 %v317_v19  ;;  %v248_v28 = vld [vmem:[%s845_s15 + $0x120] sm:$0xff]  ;;  %365 = vmatpush.msra.mxu1 %v316_v25  ;;  %v334_v11 = vld [vmem:[%s845_s15 + $0x3d0] sm:$0xff] }
  0x29   : > { %v313_v23 = vld [vmem:[%s845_s15 + $0x328] sm:$0xff]  ;;  %386 = vmatpush.msra.mxu2 %v249_v22  ;;  %v312_v29 = vld [vmem:[%s845_s15 + $0x320] sm:$0xff]  ;;  %346 = vmatpush.msra.mxu0 %v248_v28  ;;  %v259_v12 = vld [vmem:[%s845_s15 + $0x178] sm:$0xff] }
  0x2a   : > { %v245_v26 = vld [vmem:[%s845_s15 + $0x108] sm:$0xff]  ;;  %406 = vmatpush.msra.mxu3 %v313_v23  ;;  %v244_v32 = vld [vmem:[%s845_s15 + $0x100] sm:$0xff]  ;;  %366 = vmatpush.msra.mxu1 %v312_v29  ;;  %v323_v13 = vld [vmem:[%s845_s15 + $0x378] sm:$0xff] }
  0x2b   : > { %v309_v27 = vld [vmem:[%s845_s15 + $0x308] sm:$0xff]  ;;  %387 = vmatpush.msra.mxu2 %v245_v26  ;;  %v308_v33 = vld [vmem:[%s845_s15 + $0x300] sm:$0xff]  ;;  %347 = vmatpush.msra.mxu0 %v244_v32  ;;  %v266_v14 = vld [vmem:[%s845_s15 + $0x1b0] sm:$0xff] }
  0x2c   : > { %v241_v30 = vld [vmem:[%s845_s15 + $0xe8] sm:$0xff]  ;;  %407 = vmatpush.msra.mxu3 %v309_v27  ;;  %v240_v36 = vld [vmem:[%s845_s15 + $0xe0] sm:$0xff]  ;;  %367 = vmatpush.msra.mxu1 %v308_v33  ;;  %v330_v15 = vld [vmem:[%s845_s15 + $0x3b0] sm:$0xff] }
  0x2d   : > { %v305_v31 = vld [vmem:[%s845_s15 + $0x2e8] sm:$0xff]  ;;  %388 = vmatpush.msra.mxu2 %v241_v30  ;;  %v304_v37 = vld [vmem:[%s845_s15 + $0x2e0] sm:$0xff]  ;;  %348 = vmatpush.msra.mxu0 %v240_v36  ;;  %v255_v16 = vld [vmem:[%s845_s15 + $0x158] sm:$0xff] }
  0x2e   : > { %v237_v34 = vld [vmem:[%s845_s15 + $0xc8] sm:$0xff]  ;;  %408 = vmatpush.msra.mxu3 %v305_v31  ;;  %v236_v40 = vld [vmem:[%s845_s15 + $0xc0] sm:$0xff]  ;;  %368 = vmatpush.msra.mxu1 %v304_v37  ;;  %v319_v17 = vld [vmem:[%s845_s15 + $0x358] sm:$0xff] }
  0x2f   : > { %v301_v35 = vld [vmem:[%s845_s15 + $0x2c8] sm:$0xff]  ;;  %389 = vmatpush.msra.mxu2 %v237_v34  ;;  %v300_v41 = vld [vmem:[%s845_s15 + $0x2c0] sm:$0xff]  ;;  %349 = vmatpush.msra.mxu0 %v236_v40  ;;  %v262_v18 = vld [vmem:[%s845_s15 + $0x190] sm:$0xff] }
  0x30   : > { %v233_v38 = vld [vmem:[%s845_s15 + $0xa8] sm:$0xff]  ;;  %409 = vmatpush.msra.mxu3 %v301_v35  ;;  %v232_v44 = vld [vmem:[%s845_s15 + $0xa0] sm:$0xff]  ;;  %369 = vmatpush.msra.mxu1 %v300_v41  ;;  %v326_v19 = vld [vmem:[%s845_s15 + $0x390] sm:$0xff] }
  0x31   : > { %v297_v39 = vld [vmem:[%s845_s15 + $0x2a8] sm:$0xff]  ;;  %390 = vmatpush.msra.mxu2 %v233_v38  ;;  %v296_v45 = vld [vmem:[%s845_s15 + $0x2a0] sm:$0xff]  ;;  %350 = vmatpush.msra.mxu0 %v232_v44  ;;  %v251_v20 = vld [vmem:[%s845_s15 + $0x138] sm:$0xff] }
  0x32   : > { %v229_v42 = vld [vmem:[%s845_s15 + $0x88] sm:$0xff]  ;;  %410 = vmatpush.msra.mxu3 %v297_v39  ;;  %v228_v48 = vld [vmem:[%s845_s15 + $0x80] sm:$0xff]  ;;  %370 = vmatpush.msra.mxu1 %v296_v45  ;;  %v315_v21 = vld [vmem:[%s845_s15 + $0x338] sm:$0xff] }
  0x33   : > { %v293_v43 = vld [vmem:[%s845_s15 + $0x288] sm:$0xff]  ;;  %391 = vmatpush.msra.mxu2 %v229_v42  ;;  %v292_v49 = vld [vmem:[%s845_s15 + $0x280] sm:$0xff]  ;;  %351 = vmatpush.msra.mxu0 %v228_v48  ;;  %v258_v22 = vld [vmem:[%s845_s15 + $0x170] sm:$0xff] }
  0x34   : > { %v225_v46 = vld [vmem:[%s845_s15 + $0x68] sm:$0xff]  ;;  %411 = vmatpush.msra.mxu3 %v293_v43  ;;  %v224_v52 = vld [vmem:[%s845_s15 + $0x60] sm:$0xff]  ;;  %371 = vmatpush.msra.mxu1 %v292_v49  ;;  %v322_v23 = vld [vmem:[%s845_s15 + $0x370] sm:$0xff] }
  0x35   : > { %v289_v47 = vld [vmem:[%s845_s15 + $0x268] sm:$0xff]  ;;  %392 = vmatpush.msra.mxu2 %v225_v46  ;;  %v288_v53 = vld [vmem:[%s845_s15 + $0x260] sm:$0xff]  ;;  %352 = vmatpush.msra.mxu0 %v224_v52  ;;  %v247_v24 = vld [vmem:[%s845_s15 + $0x118] sm:$0xff] }
  0x36   : > { %v221_v50 = vld [vmem:[%s845_s15 + $0x48] sm:$0xff]  ;;  %412 = vmatpush.msra.mxu3 %v289_v47  ;;  %v220_v56 = vld [vmem:[%s845_s15 + $0x40] sm:$0xff]  ;;  %372 = vmatpush.msra.mxu1 %v288_v53  ;;  %v311_v25 = vld [vmem:[%s845_s15 + $0x318] sm:$0xff] }
  0x37   : > { %v285_v51 = vld [vmem:[%s845_s15 + $0x248] sm:$0xff]  ;;  %393 = vmatpush.msra.mxu2 %v221_v50  ;;  %v284_v57 = vld [vmem:[%s845_s15 + $0x240] sm:$0xff]  ;;  %353 = vmatpush.msra.mxu0 %v220_v56  ;;  %v254_v26 = vld [vmem:[%s845_s15 + $0x150] sm:$0xff] }
  0x38   : > { %v217_v54 = vld [vmem:[%s845_s15 + $0x28] sm:$0xff]  ;;  %413 = vmatpush.msra.mxu3 %v285_v51  ;;  %373 = vmatpush.msra.mxu1 %v284_v57  ;;  %v216_v62 = vld [vmem:[%s845_s15 + $0x20] sm:$0xff]  ;;  %v318_v27 = vld [vmem:[%s845_s15 + $0x350] sm:$0xff] }
  0x39   : > { %v281_v55 = vld [vmem:[%s845_s15 + $0x228] sm:$0xff]  ;;  %394 = vmatpush.msra.mxu2 %v217_v54  ;;  %v280_v63 = vld [vmem:[%s845_s15 + $0x220] sm:$0xff]  ;;  %354 = vmatpush.msra.mxu0 %v216_v62  ;;  %v243_v28 = vld [vmem:[%s845_s15 + $0xf8] sm:$0xff] }
  0x3a   : > { %v213_v58 = vld [vmem:[%s845_s15 + $0x8] sm:$0xff]  ;;  %414 = vmatpush.msra.mxu3 %v281_v55  ;;  %v212_v2 = vld [vmem:[%s845_s15] sm:$0xff]  ;;  %374 = vmatpush.msra.mxu1 %v280_v63  ;;  %v307_v29 = vld [vmem:[%s845_s15 + $0x2f8] sm:$0xff] }
  0x3b   : > { %v277_v59 = vld [vmem:[%s845_s15 + $0x208] sm:$0xff]  ;;  %395 = vmatpush.msra.mxu2 %v213_v58  ;;  %v276_v3 = vld [vmem:[%s845_s15 + $0x200] sm:$0xff]  ;;  %355 = vmatpush.msra.mxu0 %v212_v2  ;;  %v250_v30 = vld [vmem:[%s845_s15 + $0x130] sm:$0xff] }
  0x3c   : > { %415 = vmatpush.msra.mxu3 %v277_v59  ;;  %375 = vmatpush.msra.mxu1 %v276_v3  ;;  %v314_v31 = vld [vmem:[%s845_s15 + $0x330] sm:$0xff]  ;;  %v239_v32 = vld [vmem:[%s845_s15 + $0xd8] sm:$0xff]  ;;  %v210_v42 = vld [vmem:[%s1008_s1] sm:$0xff] }
  0x3d   : > { %460 = vmatpush.msrb.mxu2 %v275_v60  ;;  %420 = vmatpush.msrb.mxu0 %v274_v6  ;;  %v303_v33 = vld [vmem:[%s845_s15 + $0x2d8] sm:$0xff]  ;;  %v246_v34 = vld [vmem:[%s845_s15 + $0x110] sm:$0xff]  ;;  %v211_v43 = vld [vmem:[%s1008_s1 + $0x8] sm:$0xff] }
  0x3e   : > { %480 = vmatpush.msrb.mxu3 %v339_v61  ;;  %440 = vmatpush.msrb.mxu1 %v338_v7  ;;  %v310_v35 = vld [vmem:[%s845_s15 + $0x310] sm:$0xff]  ;;  %v235_v36 = vld [vmem:[%s845_s15 + $0xb8] sm:$0xff] }
  0x3f   : > { %461 = vmatpush.msrb.mxu2 %v271_v0  ;;  %421 = vmatpush.msrb.mxu0 %v270_v10  ;;  %v299_v37 = vld [vmem:[%s845_s15 + $0x2b8] sm:$0xff]  ;;  %v242_v38 = vld [vmem:[%s845_s15 + $0xf0] sm:$0xff] }
  0x40   : > { %481 = vmatpush.msrb.mxu3 %v335_v1  ;;  %441 = vmatpush.msrb.mxu1 %v334_v11  ;;  %v306_v39 = vld [vmem:[%s845_s15 + $0x2f0] sm:$0xff]  ;;  %v231_v40 = vld [vmem:[%s845_s15 + $0x98] sm:$0xff] }
  0x41   : > { %462 = vmatpush.msrb.mxu2 %v267_v4  ;;  %422 = vmatpush.msrb.mxu0 %v266_v14  ;;  %v295_v41 = vld [vmem:[%s845_s15 + $0x298] sm:$0xff]  ;;  %v238_v44 = vld [vmem:[%s845_s15 + $0xd0] sm:$0xff] }
  0x42   : > { %482 = vmatpush.msrb.mxu3 %v331_v5  ;;  %442 = vmatpush.msrb.mxu1 %v330_v15  ;;  %v302_v45 = vld [vmem:[%s845_s15 + $0x2d0] sm:$0xff]  ;;  %v227_v46 = vld [vmem:[%s845_s15 + $0x78] sm:$0xff] }
  0x43   : > { %463 = vmatpush.msrb.mxu2 %v263_v8  ;;  %423 = vmatpush.msrb.mxu0 %v262_v18  ;;  %v291_v47 = vld [vmem:[%s845_s15 + $0x278] sm:$0xff]  ;;  %v234_v48 = vld [vmem:[%s845_s15 + $0xb0] sm:$0xff] }
  0x44   : > { %483 = vmatpush.msrb.mxu3 %v327_v9  ;;  %443 = vmatpush.msrb.mxu1 %v326_v19  ;;  %v298_v49 = vld [vmem:[%s845_s15 + $0x2b0] sm:$0xff]  ;;  %v223_v50 = vld [vmem:[%s845_s15 + $0x58] sm:$0xff] }
  0x45   : > { %464 = vmatpush.msrb.mxu2 %v259_v12  ;;  %424 = vmatpush.msrb.mxu0 %v258_v22  ;;  %v287_v51 = vld [vmem:[%s845_s15 + $0x258] sm:$0xff]  ;;  %v230_v52 = vld [vmem:[%s845_s15 + $0x90] sm:$0xff] }
  0x46   : > { %484 = vmatpush.msrb.mxu3 %v323_v13  ;;  %444 = vmatpush.msrb.mxu1 %v322_v23  ;;  %v294_v53 = vld [vmem:[%s845_s15 + $0x290] sm:$0xff]  ;;  %v219_v54 = vld [vmem:[%s845_s15 + $0x38] sm:$0xff] }
  0x47   : > { %465 = vmatpush.msrb.mxu2 %v255_v16  ;;  %425 = vmatpush.msrb.mxu0 %v254_v26  ;;  %v283_v55 = vld [vmem:[%s845_s15 + $0x238] sm:$0xff]  ;;  %v226_v56 = vld [vmem:[%s845_s15 + $0x70] sm:$0xff] }
  0x48   : > { %485 = vmatpush.msrb.mxu3 %v319_v17  ;;  %445 = vmatpush.msrb.mxu1 %v318_v27  ;;  %v290_v57 = vld [vmem:[%s845_s15 + $0x270] sm:$0xff]  ;;  %v215_v58 = vld [vmem:[%s845_s15 + $0x18] sm:$0xff] }
  0x49   : > { %466 = vmatpush.msrb.mxu2 %v251_v20  ;;  %426 = vmatpush.msrb.mxu0 %v250_v30  ;;  %v279_v59 = vld [vmem:[%s845_s15 + $0x218] sm:$0xff]  ;;  %v222_v60 = vld [vmem:[%s845_s15 + $0x50] sm:$0xff] }
  0x4a   : > { %486 = vmatpush.msrb.mxu3 %v315_v21  ;;  %446 = vmatpush.msrb.mxu1 %v314_v31  ;;  %v286_v61 = vld [vmem:[%s845_s15 + $0x250] sm:$0xff] }
  0x4b   : > { %467 = vmatpush.msrb.mxu2 %v247_v24  ;;  %427 = vmatpush.msrb.mxu0 %v246_v34  ;;  %v218_v62 = vld [vmem:[%s845_s15 + $0x30] sm:$0xff] }
  0x4c   : > { %487 = vmatpush.msrb.mxu3 %v311_v25  ;;  %447 = vmatpush.msrb.mxu1 %v310_v35  ;;  %v282_v63 = vld [vmem:[%s845_s15 + $0x230] sm:$0xff] }
  0x4d   : > { %468 = vmatpush.msrb.mxu2 %v243_v28  ;;  %428 = vmatpush.msrb.mxu0 %v242_v38  ;;  %v214_v0 = vld [vmem:[%s845_s15 + $0x10] sm:$0xff] }
  0x4e   : > { %488 = vmatpush.msrb.mxu3 %v307_v29  ;;  %448 = vmatpush.msrb.mxu1 %v306_v39  ;;  %v278_v1 = vld [vmem:[%s845_s15 + $0x210] sm:$0xff] }
  0x4f   : > { %469 = vmatpush.msrb.mxu2 %v239_v32  ;;  %416 = vmatmul.f32.vlgmr.msra.gmra.mxu3 %v211_v43 }
  0x50   : > { %489 = vmatpush.msrb.mxu3 %v303_v33  ;;  %396 = vmatmul.f32.vlgmr.msra.gmra.mxu2 %v210_v42 }
  0x51   : > { %470 = vmatpush.msrb.mxu2 %v235_v36  ;;  %429 = vmatpush.msrb.mxu0 %v238_v44 }
  0x52   : > { %490 = vmatpush.msrb.mxu3 %v299_v37  ;;  %449 = vmatpush.msrb.mxu1 %v302_v45 }
  0x53   : > { %471 = vmatpush.msrb.mxu2 %v231_v40  ;;  %430 = vmatpush.msrb.mxu0 %v234_v48 }
  0x54   : > { %491 = vmatpush.msrb.mxu3 %v295_v41  ;;  %450 = vmatpush.msrb.mxu1 %v298_v49 }
  0x55   : > { %472 = vmatpush.msrb.mxu2 %v227_v46  ;;  %431 = vmatpush.msrb.mxu0 %v230_v52 }
  0x56   : > { %492 = vmatpush.msrb.mxu3 %v291_v47  ;;  %451 = vmatpush.msrb.mxu1 %v294_v53 }
  0x57   : > { %473 = vmatpush.msrb.mxu2 %v223_v50  ;;  %356 = vmatmul.f32.vlgmr.msra.gmra.mxu0 %v210_v42 }
  0x58   : > { %493 = vmatpush.msrb.mxu3 %v287_v51  ;;  %376 = vmatmul.f32.vlgmr.msra.gmra.mxu1 %v211_v43 }
  0x59   : > { %474 = vmatpush.msrb.mxu2 %v219_v54  ;;  %432 = vmatpush.msrb.mxu0 %v226_v56 }
  0x5a   : > { %494 = vmatpush.msrb.mxu3 %v283_v55  ;;  %452 = vmatpush.msrb.mxu1 %v290_v57 }
  0x5b   : > { %475 = vmatpush.msrb.mxu2 %v215_v58  ;;  %433 = vmatpush.msrb.mxu0 %v222_v60 }
  0x5c   : > { %495 = vmatpush.msrb.mxu3 %v279_v59  ;;  %453 = vmatpush.msrb.mxu1 %v286_v61 }
  0x5d   : > { %476 = vmatmul.f32.vlgmr.msrb.gmra.mxu2 %v210_v42  ;;  %496 = vmatmul.f32.vlgmr.msrb.gmra.mxu3 %v211_v43 }
  0x5e   : > { %434 = vmatpush.msrb.mxu0 %v218_v62  ;;  %454 = vmatpush.msrb.mxu1 %v282_v63 }
  0x60   : > { %435 = vmatpush.msrb.mxu0 %v214_v0  ;;  %455 = vmatpush.msrb.mxu1 %v278_v1 }
  0x61   : > { %436 = vmatmul.f32.vlgmr.msrb.gmra.mxu0 %v210_v42  ;;  %456 = vmatmul.f32.vlgmr.msrb.gmra.mxu1 %v211_v43 }
  0xd2   : > { %v417_v6 = vpop.f32.mrf.mxu3 }
  0xd3   : > { %v397_v5 = vpop.f32.mrf.mxu2 }
  0xd4   : > { %v357_v2 = vpop.f32.mrf.mxu0  ;;  %v418_v7 = vadd.f32 %v417_v6, %v397_v5 }
  0xd5   : > { %v377_v3 = vpop.f32.mrf.mxu1 }
  0xd6   : > { %v378_v4 = vadd.f32 %v377_v3, %v357_v2  ;;  %501 = vst [vmem:[%s208_s26 + $0x8] sm:$0xff] %v418_v7 }
  0xd8   : > { %500 = vst [vmem:[%s208_s26] sm:$0xff] %v378_v4 }
  0xde   : > { %v437_v8 = vpop.f32.mrf.mxu0  ;;  %v457_v9 = vpop.f32.mrf.mxu1 }
  0xdf   : > { %v458_v10 = vadd.f32 %v457_v9, %v437_v8 }
  0xe0   : > { %v477_v11 = vpop.f32.mrf.mxu2  ;;  %v497_v12 = vpop.f32.mrf.mxu3 }
  0xe1   : > { %502 = vst [vmem:[%s208_s26 + $0x10] sm:$0xff] %v458_v10  ;;  %v498_v13 = vadd.f32 %v497_v12, %v477_v11 }
  0xe3   : > { %503 = vst [vmem:[%s208_s26 + $0x18] sm:$0xff] %v498_v13 }
  0xe4 PF: > { %s15_s14 = sadd.s32 1, %s764_s14   ;;  %s1012_s9 = smov %s748_s10 }
  0xe5   : > { %p12_p0 = scmp.ge.s32.totalorder %s15_s14, 4   ;;  %s1013_s10 = smov %s752_s11 }
  0xe6   : > { %s1014_s11 = smov %s833_s21  ;;  %s1015_s12 = smov %s760_s13 }
  0xe7   : > { %s1016_s13 = smov %s1018_s16  ;;  %14 = sbr.rel (!%p12_p0) target bundleno = 4 (0x4), region = 71 }
  0xec   :  { %534 = vsyncpa [#allocation3], 1 }
  0xed   :  { %536 = vsyncpa [#allocation3 + $0x1], 1 }

</bundles_post_ra>
